<compile_context>
chip_gen: v7x
topology: tpu7x:2x2x1
jax: 0.10.0
libtpu: 0.0.40
codegen_flags: <defaults>
</compile_context>

<pallas_src>
import jax
import jax.numpy as jnp
from jax.experimental import pallas as pl
from jax.experimental.pallas import tpu as pltpu

# ---------------- config (small, consistent with the module) ----------------
BATCH = 2
SEQ = 8
STATE_SIZE = 12
D_MODEL = 32
NUM_LAYERS = 2
VALUE_SIZE = 1          # the VPU final-projection path below assumes value_size == 1

# ---------------- padded layout constants (static, (8,128)-aligned) ---------
LANE = 128                                      # hidden dim padded to one full lane tile
F_PAD = 16                                      # STATE_SIZE (12) padded to sublane multiple of 8

# Row offsets of each parameter inside the packed slab (shape (SLAB_ROWS, LANE)).
_W0_OFF = 0                                     # fused (w_emb @ w_net[0]) weight, F_PAD rows
_WL_OFF = _W0_OFF + F_PAD                       # w_net[1..L-1], LANE rows each
_B_OFF = _WL_OFF + (NUM_LAYERS - 1) * LANE      # biases b0'..b_{L-1}, one row each
_WFIN_OFF = _B_OFF + NUM_LAYERS                 # final-layer weight (transposed), one row
_BFIN_OFF = _WFIN_OFF + 1                       # final-layer bias (lane 0), one row
SLAB_ROWS = (-(-(_BFIN_OFF + 1) // 8)) * 8      # total rows padded to a multiple of 8


# ------------------------------- kernel -------------------------------------
def critic_kernel(state_ref, slab_ref, out_ref):
    # Fused embedding + net layer 0:  ReLU(state @ W0' + b0')
    h = jnp.maximum(
        jnp.dot(state_ref[...], slab_ref[_W0_OFF:_W0_OFF + F_PAD, :],
                preferred_element_type=jnp.float32)
        + slab_ref[_B_OFF:_B_OFF + 1, :],
        0.0)

    # Remaining net layers: Linear + ReLU (zero-padded lanes stay zero).
    for l in range(1, NUM_LAYERS):
        w_off = _WL_OFF + (l - 1) * LANE
        h = jnp.maximum(
            jnp.dot(h, slab_ref[w_off:w_off + LANE, :],
                    preferred_element_type=jnp.float32)
            + slab_ref[_B_OFF + l:_B_OFF + l + 1, :],
            0.0)

    # BaseCritic applies another ReLU here; idempotent after the trailing ReLU
    # above, so it is elided (free either way).

    # final_layer: Linear(d_model, 1) done as VPU multiply + XLU lane reduce
    # instead of an N=1 MXU matmul (pure pipeline/drain latency on the MXU).
    w_fin_row = slab_ref[_WFIN_OFF:_WFIN_OFF + 1, :]          # (1, LANE), zeros past D_MODEL
    b_fin = slab_ref[_BFIN_OFF:_BFIN_OFF + 1, 0:1]            # (1, 1)
    val = jnp.sum(h * w_fin_row, axis=-1, keepdims=True) + b_fin   # (M, 1)

    # Lane-dense (unmasked) full-vreg store; the wrapper keeps only column 0.
    out_ref[...] = jnp.broadcast_to(val, out_ref.shape)


# ------------------------- parameter packing (wrapper-side) ------------------
def pack_params(params):
    """Fold the embedding into net layer 0 and pack everything into one slab."""
    w_emb, b_emb, w_net, b_net, w_fin, b_fin = params
    w0 = w_emb @ w_net[0]                      # (STATE_SIZE, D_MODEL)
    b0 = b_emb @ w_net[0] + b_net[0]           # (1, D_MODEL)

    slab = jnp.zeros((SLAB_ROWS, LANE), jnp.float32)
    slab = slab.at[_W0_OFF:_W0_OFF + STATE_SIZE, :D_MODEL].set(w0)
    for l in range(1, NUM_LAYERS):
        off = _WL_OFF + (l - 1) * LANE
        slab = slab.at[off:off + D_MODEL, :D_MODEL].set(w_net[l])
    slab = slab.at[_B_OFF, :D_MODEL].set(b0[0])
    for l in range(1, NUM_LAYERS):
        slab = slab.at[_B_OFF + l, :D_MODEL].set(b_net[l, 0])
    slab = slab.at[_WFIN_OFF, :D_MODEL].set(w_fin[:, 0])
    slab = slab.at[_BFIN_OFF, 0].set(b_fin[0, 0])
    return slab


# ------------------------------- wrapper -------------------------------------
def single_input_critic(state, params):
    B, S, F = state.shape
    M = B * S
    state2d = jnp.pad(state.reshape(M, F), ((0, 0), (0, F_PAD - F)))
    slab = pack_params(params)

    # Advisory cost: tiny, latency-bound kernel.
    flops = 2 * M * (F_PAD * LANE + (NUM_LAYERS - 1) * LANE * LANE) + 4 * M * LANE
    bytes_accessed = 4 * (state2d.size + slab.size + M * LANE)

    # Single gridless invocation: everything (~80 KB) is resident in VMEM, so
    # there is no per-step pipeline overhead and exactly 2 input DMAs.
    out_pad = pl.pallas_call(
        critic_kernel,
        out_shape=jax.ShapeDtypeStruct((M, LANE), jnp.float32),
        in_specs=[pl.BlockSpec(memory_space=pltpu.MemorySpace.VMEM)] * 2,
        out_specs=pl.BlockSpec(memory_space=pltpu.MemorySpace.VMEM),
        cost_estimate=pl.CostEstimate(flops=flops, transcendentals=0,
                                      bytes_accessed=bytes_accessed),
    )(state2d, slab)

    # TODO(synk): for much larger M, tile rows with a grid (TM >= 512), mark the
    #             row axis "parallel" so v7x's two TensorCores split it, and cast
    #             matmul operands to bf16 (f32 accumulation) on v6e/v7x.
    return out_pad[:, :VALUE_SIZE].reshape(B, S, VALUE_SIZE)


# ------------------------- deterministic param init --------------------------
def init_params(key):
    ks = jax.random.split(key, 4)

    def xavier(k, shape):
        fan_in, fan_out = shape[-2], shape[-1]
        lim = (6.0 / (fan_in + fan_out)) ** 0.5
        return jax.random.uniform(k, shape, jnp.float32, -lim, lim)

    w_emb = xavier(ks[0], (STATE_SIZE, D_MODEL))
    b_emb = jnp.zeros((1, D_MODEL), jnp.float32)
    w_net = xavier(ks[1], (NUM_LAYERS, D_MODEL, D_MODEL))
    b_net = jnp.zeros((NUM_LAYERS, 1, D_MODEL), jnp.float32)
    w_fin = xavier(ks[2], (D_MODEL, VALUE_SIZE))
    b_fin = jnp.zeros((1, VALUE_SIZE), jnp.float32)
    return (w_emb, b_emb, w_net, b_net, w_fin, b_fin)


# ------------------------------ pure-JAX reference ---------------------------
def reference(state, params):
    w_emb, b_emb, w_net, b_net, w_fin, b_fin = params
    h = state @ w_emb + b_emb
    for l in range(NUM_LAYERS):
        h = jnp.maximum(h @ w_net[l] + b_net[l], 0.0)
    h = jnp.maximum(h, 0.0)   # BaseCritic's extra ReLU (no-op numerically)
    return h @ w_fin + b_fin


if __name__ == "__main__":
    key = jax.random.PRNGKey(0)
    k_s, k_p = jax.random.split(key, 2)
    state = jax.random.normal(k_s, (BATCH, SEQ, STATE_SIZE), jnp.float32)
    params = init_params(k_p)

    out = single_input_critic(state, params)
    out = jax.block_until_ready(out)

    ref = reference(state, params)
    assert out.shape == (BATCH, SEQ, VALUE_SIZE)
    # Note: the embedding-into-layer-0 fold and the VPU/XLU final projection
    # only change results by floating-point reassociation (~1e-6), within tol.
    assert jnp.allclose(out, ref, atol=2e-5, rtol=1e-5)
    print("KERNEL_OK")
</pallas_src>

<mosaic_0001>
module attributes {stable_mosaic.version = 11 : i64} {
  func.func @critic_kernel(%arg0: memref<16x16xf32, #tpu.memory_space<vmem>>, %arg1: memref<152x128xf32, #tpu.memory_space<vmem>>, %arg2: memref<16x128xf32, #tpu.memory_space<vmem>>) attributes {dimension_semantics = [], scalar_prefetch = 0 : i64, scratch_operands = 0 : i64, tpu.core_type = #tpu.core_type<tc>} {
    %c0 = arith.constant 0 : index
    %c0_0 = arith.constant 0 : index
    %0 = vector.load %arg0[%c0, %c0_0] : memref<16x16xf32, #tpu.memory_space<vmem>>, vector<16x16xf32>
    %c0_1 = arith.constant 0 : index
    %c0_2 = arith.constant 0 : index
    %1 = vector.load %arg1[%c0_1, %c0_2] : memref<152x128xf32, #tpu.memory_space<vmem>>, vector<16x128xf32>
    %cst = arith.constant dense<0.000000e+00> : vector<16x128xf32>
    %2 = tpu.matmul %0, %1, %cst {dimension_numbers = #tpu.dot_dimension_numbers<[1], [0], [0], [1], [0, 0, 1, 1], [], []>} : vector<16x16xf32>, vector<16x128xf32>, vector<16x128xf32> -> vector<16x128xf32>
    %c144 = arith.constant 144 : index
    %c0_3 = arith.constant 0 : index
    %3 = vector.load %arg1[%c144, %c0_3] : memref<152x128xf32, #tpu.memory_space<vmem>>, vector<1x128xf32>
    %4 = vector.broadcast %3 : vector<1x128xf32> to vector<16x128xf32>
    %5 = arith.addf %2, %4 : vector<16x128xf32>
    %cst_4 = arith.constant 0.000000e+00 : f32
    %6 = vector.broadcast %cst_4 : f32 to vector<16x128xf32>
    %7 = arith.maximumf %5, %6 : vector<16x128xf32>
    %c16 = arith.constant 16 : index
    %c0_5 = arith.constant 0 : index
    %8 = vector.load %arg1[%c16, %c0_5] : memref<152x128xf32, #tpu.memory_space<vmem>>, vector<128x128xf32>
    %cst_6 = arith.constant dense<0.000000e+00> : vector<16x128xf32>
    %9 = tpu.matmul %7, %8, %cst_6 {dimension_numbers = #tpu.dot_dimension_numbers<[1], [0], [0], [1], [0, 0, 1, 1], [], []>} : vector<16x128xf32>, vector<128x128xf32>, vector<16x128xf32> -> vector<16x128xf32>
    %c145 = arith.constant 145 : index
    %c0_7 = arith.constant 0 : index
    %10 = vector.load %arg1[%c145, %c0_7] : memref<152x128xf32, #tpu.memory_space<vmem>>, vector<1x128xf32>
    %11 = vector.broadcast %10 : vector<1x128xf32> to vector<16x128xf32>
    %12 = arith.addf %9, %11 : vector<16x128xf32>
    %cst_8 = arith.constant 0.000000e+00 : f32
    %13 = vector.broadcast %cst_8 : f32 to vector<16x128xf32>
    %14 = arith.maximumf %12, %13 : vector<16x128xf32>
    %c146 = arith.constant 146 : index
    %c0_9 = arith.constant 0 : index
    %15 = vector.load %arg1[%c146, %c0_9] : memref<152x128xf32, #tpu.memory_space<vmem>>, vector<1x128xf32>
    %c147 = arith.constant 147 : index
    %c0_10 = arith.constant 0 : index
    %16 = vector.load %arg1[%c147, %c0_10] : memref<152x128xf32, #tpu.memory_space<vmem>>, vector<1x1xf32>
    %17 = vector.broadcast %15 : vector<1x128xf32> to vector<16x128xf32>
    %18 = arith.mulf %14, %17 : vector<16x128xf32>
    %cst_11 = arith.constant dense<0.000000e+00> : vector<16xf32>
    %19 = vector.multi_reduction <add>, %18, %cst_11 [1] : vector<16x128xf32> to vector<16xf32>
    %20 = vector.shape_cast %19 : vector<16xf32> to vector<16x1xf32>
    %21 = vector.broadcast %16 : vector<1x1xf32> to vector<16x1xf32>
    %22 = arith.addf %20, %21 : vector<16x1xf32>
    %23 = vector.shape_cast %22 : vector<16x1xf32> to vector<16x1xf32>
    %24 = vector.broadcast %23 : vector<16x1xf32> to vector<16x128xf32>
    %c0_12 = arith.constant 0 : index
    %c0_13 = arith.constant 0 : index
    %25 = vector.load %arg2[%c0_12, %c0_13] : memref<16x128xf32, #tpu.memory_space<vmem>>, vector<16x128xf32>
    tpu.vector_store %arg2[%c0_12, %c0_13], %24 {strides = array<i32>} : memref<16x128xf32, #tpu.memory_space<vmem>>, vector<16x128xf32>,
    return
  }
}

</mosaic_0001>

<bundles_post_ra>
// kernel: tpu_custom_call.1
= control target key start
LH: loop header
LB: loop body
LE: loop exit
PB: predicated region body
PF: predicated region fallthrough
CT: control target
= control target key end

     0   :  { %7 = vsyncpa [#allocation3], 0  ;;  %s533_s0 = inlined_call_operand.hbm [shape: f32[16,16], index: 0, kind: input, shape index: {}]   ;;  %s534_s1 = inlined_call_operand.hbm [shape: f32[152,128], index: 1, kind: input, shape index: {}]   ;;  %s535_s2 = inlined_call_operand.hbm [shape: f32[16,128], index: 2, kind: output, shape index: {}]  }
   0x1   :  { %8 = vsyncpa [#allocation6], 0 }
   0x2   :  { %9 = vsyncpa [#allocation4], 0  ;;  %s465_s9 = smov [#allocation2]   ;;  %s393_s13 = scalar_lea.hbm %s533_s0, 256 }
   0x3   :  { %s15_s10 = sshll.u32 %s465_s9, 4  ;;  %p394_p0 = scmp.ne.s32.totalorder %s533_s0, %s393_s13  ;;  %s16_s10 = int_to_ptr.vmem [resolvable:$true] %s15_s10 }
   0x4   :  { %p397_p1 = scmp.lt.u32.totalorder %s393_s13, %s533_s0 }
   0x6   :  { %p399_p2 = pnand %p397_p1, %p394_p0 }
   0x8   :  { %402 = shalt.err (!%p399_p2)
}
   0x9   :  { %s403_s18 = scalar_lea.vmem %s16_s10, 256  ;;  %p408_p4 = scmp.lt.s32.totalorder %s16_s10, %s16_s10 }
   0xa   :  { %p404_p3 = scmp.ne.s32.totalorder %s16_s10, %s403_s18  ;;  %p409_p5 = scmp.lt.s32.totalorder %s403_s18, %s403_s18 }
   0xc   :  { %p410_p6 = por %p409_p5, %p408_p4 }
   0xe   :  { %p411_p7 = pnand %p410_p6, %p404_p3 }
  0x10   :  { %414 = shalt.err (!%p411_p7)
}
  0x11   :  { %s466_s19 = smov 128   ;;  %s467_s20 = smov 8  }
  0x12   :  { %21 = dma.hbm_to_vmem [thread:$0]  %s533_s0, 256, %s16_s10, [#allocation3], %s466_s19, %s466_s19, %s467_s20  }
  0x13   :  { %s468_s23 = smov [#allocation5]   ;;  %s415_s27 = scalar_lea.hbm %s534_s1, 2432 }
  0x14   :  { %s27_s24 = sshll.u32 %s468_s23, 4  ;;  %p416_p8 = scmp.ne.s32.totalorder %s534_s1, %s415_s27  ;;  %s28_s24 = int_to_ptr.vmem [resolvable:$true] %s27_s24 }
  0x15   :  { %p419_p9 = scmp.lt.u32.totalorder %s415_s27, %s534_s1 }
  0x17   :  { %p421_p10 = pnand %p419_p9, %p416_p8 }
  0x19   :  { %424 = shalt.err (!%p421_p10)
}
  0x1a   :  { %s425_s4 = scalar_lea.vmem %s28_s24, 2432  ;;  %p430_p12 = scmp.lt.s32.totalorder %s28_s24, %s28_s24 }
  0x1b   :  { %p426_p11 = scmp.ne.s32.totalorder %s28_s24, %s425_s4  ;;  %p431_p13 = scmp.lt.s32.totalorder %s425_s4, %s425_s4 }
  0x1d   :  { %p432_p0 = por %p431_p13, %p430_p12 }
  0x1f   :  { %p433_p1 = pnand %p432_p0, %p426_p11 }
  0x21   :  { %436 = shalt.err (!%p433_p1)
}
  0x22   :  { %33 = dma.hbm_to_vmem [thread:$0]  %s534_s1, 2432, %s28_s24, [#allocation6], %s466_s19, %s466_s19, %s467_s20  }
  0x23   :  { %459 = dma.done.wait [#allocation3], 256  }
  0x24   :  { %460 = vsyncadd [#allocation3], 4294967040 }
  0x25   :  { %461 = dma.done.wait [#allocation6], 2432  }
  0x26   :  { %462 = vsyncadd [#allocation6], 4294964864  ;;  %vm49_vm0 = vcmask 130048   ;;  %v42_v0 = vld [vmem:[#allocation5] sm:$0xff]  ;;  %v43_v1 = vld [vmem:[#allocation5 + $0x8] sm:$0xff]  ;;  %v469_v46 = vmov 0  }
  0x27   :  { %v40_v2 = vld [vmem:[#allocation2] sm:$0xff]  ;;  %v349_v3 = vpack.c.bf16 %v43_v1, %v42_v0  ;;  %v134_v5 = vld [vmem:[#allocation5 + $0x18] sm:$0xff]  ;;  %v135_v7 = vld [vmem:[#allocation5 + $0x20] sm:$0xff]  ;;  %391 = vset.pattern.permute.xlu1 %v469_v46  ;;  %392 = vset.pattern.permute.xlu0 %v469_v46  ;;  %s470_s1 = smov [#allocation7]  }
  0x28   :  { %311 = vmatprep.mubr.msk.f32.mxu0 %vm49_vm0, %v40_v2  ;;  %v133_v4 = vld [vmem:[#allocation5 + $0x10] sm:$0xff]  ;;  %v136_v8 = vld [vmem:[#allocation5 + $0x28] sm:$0xff]  ;;  %v138_v11 = vld [vmem:[#allocation5 + $0x38] sm:$0xff]  ;;  %s266_s6 = sshll.u32 %s470_s1, 4  ;;  %s267_s6 = int_to_ptr.vmem [resolvable:$true] %s266_s6 }
  0x29   :  { %v353_v6 = vpack.c.bf16 %v134_v5, %v133_v4  ;;  %350 = vmatprep.subr.bf16.mxu0 %v349_v3  ;;  %v357_v9 = vpack.c.bf16 %v136_v8, %v135_v7  ;;  %v137_v10 = vld [vmem:[#allocation5 + $0x30] sm:$0xff]  ;;  %v41_v12 = vld [vmem:[#allocation2 + $0x8] sm:$0xff]  ;;  %v139_v14 = vld [vmem:[#allocation5 + $0x40] sm:$0xff]  ;;  %s437_s7 = scalar_lea.vmem %s267_s6, 256  ;;  %p442_p3 = scmp.lt.s32.totalorder %s267_s6, %s267_s6 }
  0x2a   :  { %352 = vmatpush3.bf16.msra.mxu0 %v349_v3  ;;  %v361_v13 = vpack.c.bf16 %v138_v11, %v137_v10  ;;  %v140_v15 = vld [vmem:[#allocation5 + $0x48] sm:$0xff]  ;;  %v141_v17 = vld [vmem:[#allocation5 + $0x50] sm:$0xff]  ;;  %v142_v18 = vld [vmem:[#allocation5 + $0x58] sm:$0xff]  ;;  %p438_p2 = scmp.ne.s32.totalorder %s267_s6, %s437_s7  ;;  %p443_p4 = scmp.lt.s32.totalorder %s437_s7, %s437_s7 }
  0x2b   :  { %354 = vmatprep.subr.bf16.mxu1 %v353_v6  ;;  %v365_v16 = vpack.c.bf16 %v140_v15, %v139_v14  ;;  %v369_v19 = vpack.c.bf16 %v142_v18, %v141_v17  ;;  %v143_v20 = vld [vmem:[#allocation5 + $0x60] sm:$0xff]  ;;  %v144_v21 = vld [vmem:[#allocation5 + $0x68] sm:$0xff]  ;;  %v145_v23 = vld [vmem:[#allocation5 + $0x70] sm:$0xff] }
  0x2c   :  { %356 = vmatpush3.bf16.msra.mxu1 %v353_v6  ;;  %v373_v22 = vpack.c.bf16 %v144_v21, %v143_v20  ;;  %v146_v24 = vld [vmem:[#allocation5 + $0x78] sm:$0xff]  ;;  %v147_v26 = vld [vmem:[#allocation5 + $0x80] sm:$0xff]  ;;  %v148_v27 = vld [vmem:[#allocation5 + $0x88] sm:$0xff]  ;;  %p444_p5 = por %p443_p4, %p442_p3 }
  0x2d   :  { %358 = vmatprep.subr.bf16.mxu1 %v357_v9  ;;  %312 = vmatmul.mubr.msk.f32.vlgmr.msra.gmra.mrb[0].mxu0 %vm49_vm0, %v41_v12  ;;  %v377_v25 = vpack.c.bf16 %v146_v24, %v145_v23  ;;  %v381_v28 = vpack.c.bf16 %v148_v27, %v147_v26  ;;  %v279_v29 = vld [vmem:[#allocation5 + $0x90] ss:$0 sm:$0xff]  ;;  %v282_v36 = vld [vmem:[#allocation5 + $0x91] ss:$0 sm:$0xff]  ;;  %v283_v41 = vld [vmem:[#allocation5 + $0x92] ss:$0 sm:$0xff] }
  0x2e   :  { %v284_v47 = vld [vmem:[#allocation5 + $0x93] ss:$0 sm:$0xff]  ;;  %p445_p6 = pnand %p444_p5, %p438_p2 }
  0x30   :  { %360 = vmatpush3.bf16.msra.mxu1 %v357_v9 }
  0x31   :  { %362 = vmatprep.subr.bf16.mxu1 %v361_v13 }
  0x34   :  { %364 = vmatpush3.bf16.msra.mxu1 %v361_v13 }
  0x35   :  { %366 = vmatprep.subr.bf16.mxu1 %v365_v16 }
  0x38   :  { %368 = vmatpush3.bf16.msra.mxu1 %v365_v16 }
  0x39   :  { %370 = vmatprep.subr.bf16.mxu1 %v369_v19 }
  0x3c   :  { %372 = vmatpush3.bf16.msra.mxu1 %v369_v19 }
  0x3d   :  { %374 = vmatprep.subr.bf16.mxu1 %v373_v22 }
  0x40   :  { %376 = vmatpush3.bf16.msra.mxu1 %v373_v22 }
  0x41   :  { %378 = vmatprep.subr.bf16.mxu1 %v377_v25 }
  0x44   :  { %380 = vmatpush3.bf16.msra.mxu1 %v377_v25 }
  0x45   :  { %382 = vmatprep.subr.bf16.mxu1 %v381_v28 }
  0x48   :  { %384 = vmatpush3.bf16.msra.mxu1 %v381_v28 }
 0x100   :  { %v313_v30 = vpop.f32.mrb[0].mxu0 }
 0x101   :  { %v128_v31 = vadd.f32 %v313_v30, %v279_v29  ;;  %v122_v32 = vpop.f32.mrb[1].mxu0 }
 0x102   :  { %v123_v33 = vadd.f32 %v279_v29, %v122_v32 }
 0x103   :  { %v132_v35 = vmax.f32 %v128_v31, 0.0 }
 0x104   :  { %v131_v34 = vmax.f32 %v123_v33, 0.0 }
 0x106   :  { %346 = vmatprep.mubr.f32.mxu1 %v131_v34 }
 0x107   :  { %347 = vmatmul.mubr.f32.vlgmr.msra.gmra.mrb[0].mxu1 %v132_v35 }
 0x1da   :  { %v348_v37 = vpop.f32.mrb[0].mxu1 }
 0x1db   :  { %v220_v38 = vpop.f32.mrb[1].mxu1  ;;  %v226_v39 = vadd.f32 %v348_v37, %v282_v36 }
 0x1dc   :  { %v221_v40 = vadd.f32 %v282_v36, %v220_v38 }
 0x1dd   :  { %v230_v43 = vmax.f32 %v226_v39, 0.0 }
 0x1de   :  { %v229_v42 = vmax.f32 %v221_v40, 0.0 }
 0x1df   :  { %v238_v45 = vmul.f32 %v283_v41, %v230_v43 }
 0x1e0   :  { %v237_v44 = vmul.f32 %v283_v41, %v229_v42 }
 0x1e2   :  { %239 = vadd.xlane.f32.xlu0 %v237_v44 }
 0x1e6   :  { %241 = vadd.xlane.f32.xlu0 %v238_v45 }
 0x26f   :  { %v240_v48 = vpop.xlane.xlu0 %239 }
 0x270   :  { %v247_v49 = vadd.f32 %v284_v47, %v240_v48 }
 0x272   :  { %251 = vperm.xlu1 %391, %v247_v49  }
 0x273   :  { %v242_v50 = vpop.xlane.xlu0 %241 }
 0x274   :  { %v248_v51 = vadd.f32 %v284_v47, %v242_v50 }
 0x276   :  { %256 = vperm.xlu1 %391, %v248_v51  }
 0x2f1   :  { %v252_v52 = vpop.permute.xlu1 %251 }
 0x2f2   :  { %259 = vst [vmem:[#allocation7] sm:$0xff] %v252_v52 }
 0x2f5   :  { %v257_v53 = vpop.permute.xlu1 %256 }
 0x2f6   :  { %260 = vst [vmem:[#allocation7 + $0x8] sm:$0xff] %v257_v53 }
 0x2f7   :  { %448 = shalt.err (!%p445_p6)
}
 0x2f8   :  { %s449_s10 = scalar_lea.hbm %s535_s2, 256 }
 0x2f9   :  { %p450_p7 = scmp.ne.s32.totalorder %s535_s2, %s449_s10  ;;  %p453_p8 = scmp.lt.u32.totalorder %s449_s10, %s535_s2 }
 0x2fb   :  { %p455_p9 = pnand %p453_p8, %p450_p7 }
 0x2fd   :  { %458 = shalt.err (!%p455_p9)
}
 0x2fe   :  { %272 = dma.vmem_to_hbm [thread:$0]  %s267_s6, 256, %s535_s2, [#allocation4], %s466_s19, %s466_s19, %s467_s20  }
 0x2ff   :  { %463 = dma.done.wait [#allocation4], 256  }
 0x300   :  { %464 = vsyncadd [#allocation4], 4294967040 }
 0x301   :  { %276 = vsyncpa [#allocation3], 1 }
 0x302   :  { %277 = vsyncpa [#allocation6], 1 }
 0x303   :  { %278 = vsyncpa [#allocation4], 1 }

</bundles_post_ra>
